<compile_context>
chip_gen: v6e
topology: v6e:2x2x1
jax: 0.10.0
libtpu: 0.0.40
codegen_flags: <defaults>
</compile_context>

<pallas_src>
import math

import jax
import jax.numpy as jnp
from jax.experimental import pallas as pl
from jax.experimental.pallas import tpu as pltpu


def _taa_kernel(wv_ref, params_ref, x_ref, o_ref):
    """One grid step = TB batch samples, all channels, full spatial extent.

    wv_ref:     SMEM f32[12]         flat [Wv[c,0], Wv[c,1], Wv[c,2], bv[c]] per channel c
    params_ref: VMEM f32[TB, 4]      per-sample [q.Wk[:,0..2], q.bk] pre-scaled by 1/sqrt(E)
    x_ref:      VMEM f32[3, TB, HW]  channel-major input block
    o_ref:      VMEM f32[3, TB, HW]
    """
    x0 = x_ref[0]                      # (TB, HW) dense sublane tiles
    x1 = x_ref[1]
    x2 = x_ref[2]
    p = params_ref[...]                # (TB, 4)

    # scores[b, pix] = (task_embedding[b] . key[b, :, pix]) / sqrt(E), with the
    # query already folded into the 1x1 key-conv weights (per-sample scalars
    # broadcast along the lane axis).
    scores = p[:, 0:1] * x0 + p[:, 1:2] * x1 + p[:, 2:3] * x2 + p[:, 3:4]   # (TB, HW)

    # Softmax over spatial positions (dim=-1 in the PyTorch module).  The divide is
    # replaced by one per-row reciprocal (EUP slot) folded into the output multiply.
    m = jnp.max(scores, axis=-1, keepdims=True)
    e = jnp.exp(scores - m)
    w = e * pl.reciprocal(jnp.sum(e, axis=-1, keepdims=True), approx=True)  # (TB, HW)

    def value_row(c):
        # value[b, c, pix] = sum_c' Wv[c, c'] * x[b, c', pix] + bv[c]   (1x1 value conv)
        return (wv_ref[4 * c + 0] * x0 + wv_ref[4 * c + 1] * x1
                + wv_ref[4 * c + 2] * x2 + wv_ref[4 * c + 3])

    # Write each output channel directly (no concatenate / extra intermediate).
    o_ref[0] = x0 + value_row(0) * w
    o_ref[1] = x1 + value_row(1) * w
    o_ref[2] = x2 + value_row(2) * w


def _choose_tb(batch, channels, hw, target_bytes=2 * 1024 * 1024):
    """Pick a batch tile (multiple of 8) giving ~target_bytes per block."""
    b_pad8 = ((batch + 7) // 8) * 8
    bytes_per_sample = channels * hw * 4
    cap = max(8, min(64, (target_bytes // bytes_per_sample) // 8 * 8, b_pad8))
    tb = 8
    for cand in range(8, cap + 1, 8):
        if b_pad8 % cand == 0:       # avoid padding more batch rows than necessary
            tb = cand
    return tb


def task_aware_attention(x, task_embedding, wk, bk, wv, bv):
    """x: f32[B, 3, H, W]; task_embedding: f32[B, E];
       wk: f32[E, 3, 1, 1]; bk: f32[E]; wv: f32[3, 3, 1, 1]; bv: f32[3]."""
    B, C, H, W = x.shape
    E = task_embedding.shape[1]
    assert C == 3, "TaskAwareAttention hard-codes 3 input channels"
    HW = H * W

    wk2 = wk.reshape(E, C).astype(jnp.float32)
    wv2 = wv.reshape(C, C).astype(jnp.float32)

    # key.shape[1] in the PyTorch code is the embed dim E -> divide by sqrt(E).
    scale = 1.0 / math.sqrt(E)

    # Contract the query into the 1x1 key-conv weights (tiny (B,E)@(E,C) matmul);
    # the x-dependent part of the key conv still runs per-pixel inside the kernel.
    qk = jnp.dot(task_embedding, wk2, preferred_element_type=jnp.float32)   # (B, C)
    qb = jnp.dot(task_embedding, bk, preferred_element_type=jnp.float32)    # (B,)
    params = jnp.concatenate([qk, qb[:, None]], axis=1) * scale             # (B, 4)
    # Flat 1D SMEM packing avoids 2D SMEM (8,128)-word padding waste.
    wv_packed = jnp.concatenate([wv2, bv[:, None]], axis=1).reshape(-1)     # (12,)

    tb = _choose_tb(B, C, HW)
    b_pad = ((B + tb - 1) // tb) * tb
    grid = b_pad // tb

    # Channel-major layout so each channel slab is a dense (TB, HW) tile
    # (layout plumbing only).  Zero-pad batch up to a multiple of TB.
    x_cm = jnp.transpose(x.reshape(B, C, HW), (1, 0, 2))                    # (C, B, HW)
    if b_pad != B:
        x_cm = jnp.pad(x_cm, ((0, 0), (0, b_pad - B), (0, 0)))
        params = jnp.pad(params, ((0, b_pad - B), (0, 0)))

    # NOTE: for the real 84x84 module HW=7056 is not a multiple of 128; the block
    # still equals the full spatial extent, so this stays correct (tail stores are
    # lane-masked).  No padding of HW -> no softmax masking needed.
    grid_spec = pltpu.PrefetchScalarGridSpec(
        num_scalar_prefetch=0,
        grid=(grid,),
        in_specs=[
            pl.BlockSpec(memory_space=pltpu.MemorySpace.SMEM),         # wv_packed (12,)
            pl.BlockSpec((tb, 4), lambda b: (b, 0)),                   # params    (TB, 4)
            pl.BlockSpec((C, tb, HW), lambda b: (0, b, 0)),            # x block   (C, TB, HW)
        ],
        out_specs=pl.BlockSpec((C, tb, HW), lambda b: (0, b, 0)),
    )

    out_cm = pl.pallas_call(
        _taa_kernel,
        out_shape=jax.ShapeDtypeStruct((C, b_pad, HW), jnp.float32),
        grid_spec=grid_spec,
        compiler_params=pltpu.CompilerParams(
            dimension_semantics=("parallel",)),
    )(wv_packed, params, x_cm)

    out = jnp.transpose(out_cm, (1, 0, 2))[:B]                              # (B, C, HW)
    return out.reshape(B, C, H, W)


if __name__ == "__main__":
    image_size = 16       # small stand-in for the module's 84x84 images
    batch = 2
    channels = 3
    embed_dim = 100       # fixed in TaskAwareAttention.build_prompt

    root = jax.random.PRNGKey(0)
    k_x, k_t, k_wk, k_bk, k_wv, k_bv = jax.random.split(root, 6)

    x = jax.random.normal(k_x, (batch, channels, image_size, image_size),
                          dtype=jnp.float32)
    task_embedding = jax.random.normal(k_t, (batch, embed_dim), dtype=jnp.float32)

    # Xavier-uniform 1x1 conv weights (as in SimpleConvolution); small random biases
    # so the bias path is exercised.
    lim_k = math.sqrt(6.0 / (embed_dim + channels))
    wk = jax.random.uniform(k_wk, (embed_dim, channels, 1, 1),
                            minval=-lim_k, maxval=lim_k, dtype=jnp.float32)
    bk = 0.1 * jax.random.normal(k_bk, (embed_dim,), dtype=jnp.float32)
    lim_v = math.sqrt(6.0 / (channels + channels))
    wv = jax.random.uniform(k_wv, (channels, channels, 1, 1),
                            minval=-lim_v, maxval=lim_v, dtype=jnp.float32)
    bv = 0.1 * jax.random.normal(k_bv, (channels,), dtype=jnp.float32)

    out = task_aware_attention(x, task_embedding, wk, bk, wv, bv)
    out = jax.block_until_ready(out)

    # Pure-JAX reference following the forward literally (per-sample attention).
    HW = image_size * image_size
    wk2 = wk.reshape(embed_dim, channels)
    wv2 = wv.reshape(channels, channels)
    x_f = x.reshape(batch, channels, HW)
    key_t = jnp.einsum('ec,bcp->bep', wk2, x_f) + bk[None, :, None]     # (B, E, HW)
    value = jnp.einsum('dc,bcp->bdp', wv2, x_f) + bv[None, :, None]     # (B, C, HW)
    scores = jnp.einsum('be,bep->bp', task_embedding, key_t) / math.sqrt(embed_dim)
    attn = jax.nn.softmax(scores, axis=-1)                              # (B, HW)
    prompt = value * attn[:, None, :]
    ref = x + prompt.reshape(batch, channels, image_size, image_size)

    # Tolerance covers the reordered E=100 reduction (query folded into the
    # key-conv weights) and the EUP approximate reciprocal in the softmax.
    assert jnp.allclose(out, ref, atol=1e-4, rtol=1e-4), "mismatch vs reference"
    print("KERNEL_OK")
</pallas_src>

<mosaic_0001>
module attributes {stable_mosaic.version = 11 : i64} {
  func.func @_taa_kernel(%arg0: i32, %arg1: memref<12xf32, #tpu.memory_space<smem>>, %arg2: memref<8x4xf32, #tpu.memory_space<vmem>>, %arg3: memref<3x8x256xf32, #tpu.memory_space<vmem>>, %arg4: memref<3x8x256xf32, #tpu.memory_space<vmem>>) attributes {dimension_semantics = [#tpu.dimension_semantics<parallel>], iteration_bounds = array<i64: 1>, scalar_prefetch = 0 : i64, scratch_operands = 0 : i64, tpu.core_type = #tpu.core_type<tc>, window_params = [{transform_indices = @transform_0, window_bounds = array<i64: 12>}, {transform_indices = @transform_1, window_bounds = array<i64: 8, 4>}, {transform_indices = @transform_2, window_bounds = array<i64: 3, 8, 256>}, {transform_indices = @transform_3, window_bounds = array<i64: 3, 8, 256>}]} {
    %c0 = arith.constant 0 : index
    %c0_0 = arith.constant 0 : index
    %c0_1 = arith.constant 0 : index
    %0 = vector.load %arg3[%c0, %c0_0, %c0_1] : memref<3x8x256xf32, #tpu.memory_space<vmem>>, vector<1x8x256xf32>
    %1 = vector.shape_cast %0 : vector<1x8x256xf32> to vector<8x256xf32>
    %c1 = arith.constant 1 : index
    %c0_2 = arith.constant 0 : index
    %c0_3 = arith.constant 0 : index
    %2 = vector.load %arg3[%c1, %c0_2, %c0_3] : memref<3x8x256xf32, #tpu.memory_space<vmem>>, vector<1x8x256xf32>
    %3 = vector.shape_cast %2 : vector<1x8x256xf32> to vector<8x256xf32>
    %c2 = arith.constant 2 : index
    %c0_4 = arith.constant 0 : index
    %c0_5 = arith.constant 0 : index
    %4 = vector.load %arg3[%c2, %c0_4, %c0_5] : memref<3x8x256xf32, #tpu.memory_space<vmem>>, vector<1x8x256xf32>
    %5 = vector.shape_cast %4 : vector<1x8x256xf32> to vector<8x256xf32>
    %c0_6 = arith.constant 0 : index
    %c0_7 = arith.constant 0 : index
    %6 = vector.load %arg2[%c0_6, %c0_7] : memref<8x4xf32, #tpu.memory_space<vmem>>, vector<8x4xf32>
    %7 = vector.extract_strided_slice %6 {offsets = [0, 0], sizes = [8, 1], strides = [1, 1]} : vector<8x4xf32> to vector<8x1xf32>
    %8 = vector.broadcast %7 : vector<8x1xf32> to vector<8x256xf32>
    %9 = arith.mulf %8, %1 : vector<8x256xf32>
    %10 = vector.extract_strided_slice %6 {offsets = [0, 1], sizes = [8, 1], strides = [1, 1]} : vector<8x4xf32> to vector<8x1xf32>
    %11 = vector.broadcast %10 : vector<8x1xf32> to vector<8x256xf32>
    %12 = arith.mulf %11, %3 : vector<8x256xf32>
    %13 = arith.addf %9, %12 : vector<8x256xf32>
    %14 = vector.extract_strided_slice %6 {offsets = [0, 2], sizes = [8, 1], strides = [1, 1]} : vector<8x4xf32> to vector<8x1xf32>
    %15 = vector.broadcast %14 : vector<8x1xf32> to vector<8x256xf32>
    %16 = arith.mulf %15, %5 : vector<8x256xf32>
    %17 = arith.addf %13, %16 : vector<8x256xf32>
    %18 = vector.extract_strided_slice %6 {offsets = [0, 3], sizes = [8, 1], strides = [1, 1]} : vector<8x4xf32> to vector<8x1xf32>
    %19 = vector.broadcast %18 : vector<8x1xf32> to vector<8x256xf32>
    %20 = arith.addf %17, %19 : vector<8x256xf32>
    %cst = arith.constant dense<0xFF800000> : vector<8xf32>
    %21 = vector.multi_reduction <maximumf>, %20, %cst [1] : vector<8x256xf32> to vector<8xf32>
    %22 = vector.shape_cast %21 : vector<8xf32> to vector<8x1xf32>
    %23 = vector.broadcast %22 : vector<8x1xf32> to vector<8x256xf32>
    %24 = arith.subf %20, %23 : vector<8x256xf32>
    %25 = math.exp %24 : vector<8x256xf32>
    %cst_8 = arith.constant dense<0.000000e+00> : vector<8xf32>
    %26 = vector.multi_reduction <add>, %25, %cst_8 [1] : vector<8x256xf32> to vector<8xf32>
    %27 = vector.shape_cast %26 : vector<8xf32> to vector<8x1xf32>
    %28 = tpu.reciprocal %27 {approx = true} : vector<8x1xf32> -> vector<8x1xf32>
    %29 = vector.broadcast %28 : vector<8x1xf32> to vector<8x256xf32>
    %30 = arith.mulf %25, %29 : vector<8x256xf32>
    %c0_9 = arith.constant 0 : index
    %31 = memref.load %arg1[%c0_9] : memref<12xf32, #tpu.memory_space<smem>>
    %32 = vector.broadcast %31 : f32 to vector<8x256xf32>
    %33 = arith.mulf %32, %1 : vector<8x256xf32>
    %c1_10 = arith.constant 1 : index
    %34 = memref.load %arg1[%c1_10] : memref<12xf32, #tpu.memory_space<smem>>
    %35 = vector.broadcast %34 : f32 to vector<8x256xf32>
    %36 = arith.mulf %35, %3 : vector<8x256xf32>
    %37 = arith.addf %33, %36 : vector<8x256xf32>
    %c2_11 = arith.constant 2 : index
    %38 = memref.load %arg1[%c2_11] : memref<12xf32, #tpu.memory_space<smem>>
    %39 = vector.broadcast %38 : f32 to vector<8x256xf32>
    %40 = arith.mulf %39, %5 : vector<8x256xf32>
    %41 = arith.addf %37, %40 : vector<8x256xf32>
    %c3 = arith.constant 3 : index
    %42 = memref.load %arg1[%c3] : memref<12xf32, #tpu.memory_space<smem>>
    %43 = vector.broadcast %42 : f32 to vector<8x256xf32>
    %44 = arith.addf %41, %43 : vector<8x256xf32>
    %45 = arith.mulf %44, %30 : vector<8x256xf32>
    %46 = arith.addf %1, %45 : vector<8x256xf32>
    %c0_12 = arith.constant 0 : index
    %c0_13 = arith.constant 0 : index
    %c0_14 = arith.constant 0 : index
    %47 = vector.load %arg4[%c0_12, %c0_13, %c0_14] : memref<3x8x256xf32, #tpu.memory_space<vmem>>, vector<1x8x256xf32>
    %48 = vector.shape_cast %47 : vector<1x8x256xf32> to vector<8x256xf32>
    %49 = vector.shape_cast %46 : vector<8x256xf32> to vector<1x8x256xf32>
    tpu.vector_store %arg4[%c0_12, %c0_13, %c0_14], %49 {strides = array<i32>} : memref<3x8x256xf32, #tpu.memory_space<vmem>>, vector<1x8x256xf32>,
    %c4 = arith.constant 4 : index
    %50 = memref.load %arg1[%c4] : memref<12xf32, #tpu.memory_space<smem>>
    %51 = vector.broadcast %50 : f32 to vector<8x256xf32>
    %52 = arith.mulf %51, %1 : vector<8x256xf32>
    %c5 = arith.constant 5 : index
    %53 = memref.load %arg1[%c5] : memref<12xf32, #tpu.memory_space<smem>>
    %54 = vector.broadcast %53 : f32 to vector<8x256xf32>
    %55 = arith.mulf %54, %3 : vector<8x256xf32>
    %56 = arith.addf %52, %55 : vector<8x256xf32>
    %c6 = arith.constant 6 : index
    %57 = memref.load %arg1[%c6] : memref<12xf32, #tpu.memory_space<smem>>
    %58 = vector.broadcast %57 : f32 to vector<8x256xf32>
    %59 = arith.mulf %58, %5 : vector<8x256xf32>
    %60 = arith.addf %56, %59 : vector<8x256xf32>
    %c7 = arith.constant 7 : index
    %61 = memref.load %arg1[%c7] : memref<12xf32, #tpu.memory_space<smem>>
    %62 = vector.broadcast %61 : f32 to vector<8x256xf32>
    %63 = arith.addf %60, %62 : vector<8x256xf32>
    %64 = arith.mulf %63, %30 : vector<8x256xf32>
    %65 = arith.addf %3, %64 : vector<8x256xf32>
    %c1_15 = arith.constant 1 : index
    %c0_16 = arith.constant 0 : index
    %c0_17 = arith.constant 0 : index
    %66 = vector.load %arg4[%c1_15, %c0_16, %c0_17] : memref<3x8x256xf32, #tpu.memory_space<vmem>>, vector<1x8x256xf32>
    %67 = vector.shape_cast %66 : vector<1x8x256xf32> to vector<8x256xf32>
    %68 = vector.shape_cast %65 : vector<8x256xf32> to vector<1x8x256xf32>
    tpu.vector_store %arg4[%c1_15, %c0_16, %c0_17], %68 {strides = array<i32>} : memref<3x8x256xf32, #tpu.memory_space<vmem>>, vector<1x8x256xf32>,
    %c8 = arith.constant 8 : index
    %69 = memref.load %arg1[%c8] : memref<12xf32, #tpu.memory_space<smem>>
    %70 = vector.broadcast %69 : f32 to vector<8x256xf32>
    %71 = arith.mulf %70, %1 : vector<8x256xf32>
    %c9 = arith.constant 9 : index
    %72 = memref.load %arg1[%c9] : memref<12xf32, #tpu.memory_space<smem>>
    %73 = vector.broadcast %72 : f32 to vector<8x256xf32>
    %74 = arith.mulf %73, %3 : vector<8x256xf32>
    %75 = arith.addf %71, %74 : vector<8x256xf32>
    %c10 = arith.constant 10 : index
    %76 = memref.load %arg1[%c10] : memref<12xf32, #tpu.memory_space<smem>>
    %77 = vector.broadcast %76 : f32 to vector<8x256xf32>
    %78 = arith.mulf %77, %5 : vector<8x256xf32>
    %79 = arith.addf %75, %78 : vector<8x256xf32>
    %c11 = arith.constant 11 : index
    %80 = memref.load %arg1[%c11] : memref<12xf32, #tpu.memory_space<smem>>
    %81 = vector.broadcast %80 : f32 to vector<8x256xf32>
    %82 = arith.addf %79, %81 : vector<8x256xf32>
    %83 = arith.mulf %82, %30 : vector<8x256xf32>
    %84 = arith.addf %5, %83 : vector<8x256xf32>
    %c2_18 = arith.constant 2 : index
    %c0_19 = arith.constant 0 : index
    %c0_20 = arith.constant 0 : index
    %85 = vector.load %arg4[%c2_18, %c0_19, %c0_20] : memref<3x8x256xf32, #tpu.memory_space<vmem>>, vector<1x8x256xf32>
    %86 = vector.shape_cast %85 : vector<1x8x256xf32> to vector<8x256xf32>
    %87 = vector.shape_cast %84 : vector<8x256xf32> to vector<1x8x256xf32>
    tpu.vector_store %arg4[%c2_18, %c0_19, %c0_20], %87 {strides = array<i32>} : memref<3x8x256xf32, #tpu.memory_space<vmem>>, vector<1x8x256xf32>,
    return
  }
  func.func @transform_0(%arg0: i32) -> i32 {
    %c0_i32 = arith.constant 0 : i32
    %c0_i32_0 = arith.constant 0 : i32
    return %c0_i32 : i32
  }
  func.func @transform_1(%arg0: i32) -> (i32, i32) {
    %c0_i32 = arith.constant 0 : i32
    %c0_i32_0 = arith.constant 0 : i32
    return %arg0, %c0_i32 : i32, i32
  }
  func.func @transform_2(%arg0: i32) -> (i32, i32, i32) {
    %c0_i32 = arith.constant 0 : i32
    %c0_i32_0 = arith.constant 0 : i32
    %c0_i32_1 = arith.constant 0 : i32
    return %c0_i32, %arg0, %c0_i32_0 : i32, i32, i32
  }
  func.func @transform_3(%arg0: i32) -> (i32, i32, i32) {
    %c0_i32 = arith.constant 0 : i32
    %c0_i32_0 = arith.constant 0 : i32
    %c0_i32_1 = arith.constant 0 : i32
    return %c0_i32, %arg0, %c0_i32_0 : i32, i32, i32
  }
}

</mosaic_0001>

<bundles_post_ra>
// kernel: tpu_custom_call.1
= control target key start
LH: loop header
LB: loop body
LE: loop exit
PB: predicated region body
PF: predicated region fallthrough
CT: control target
= control target key end

     0   :  { %8 = vsyncpa [#allocation5], 0  ;;  %s388_s0 = inlined_call_operand.vmem [shape: f32[12], index: 0, kind: input, shape index: {}]   ;;  %s389_s1 = inlined_call_operand.vmem [shape: f32[8,4], index: 1, kind: input, shape index: {}]   ;;  %s390_s2 = inlined_call_operand.hbm [shape: f32[3,8,256], index: 2, kind: input, shape index: {}]   ;;  %s391_s3 = inlined_call_operand.hbm [shape: f32[3,8,256], index: 3, kind: output, shape index: {}]  }
   0x1   :  { %9 = vsyncpa [#allocation3], 0 }
   0x2   :  { %10 = vsyncpa [#allocation4], 0  ;;  %s17_s14 = sshll.u32 %s388_s0, 4  ;;  %s18_s14 = int_to_ptr.vmem [resolvable:$true] %s17_s14 }
   0x3   :  { %s224_s15 = scalar_lea.vmem %s18_s14, 16  ;;  %p229_p1 = scmp.lt.s32.totalorder %s18_s14, %s18_s14 }
   0x4   :  { %p225_p0 = scmp.ne.s32.totalorder %s18_s14, %s224_s15  ;;  %p230_p2 = scmp.lt.s32.totalorder %s224_s15, %s224_s15 }
   0x6   :  { %p231_p3 = por %p230_p2, %p229_p1 }
   0x8   :  { %p232_p4 = pnand %p231_p3, %p225_p0 }
   0xa   :  { %235 = shalt.err (!%p232_p4)
}
   0xb   :  { %s282_s16 = smov [#allocation2]   ;;  %s283_s17 = smov [#allocation6]  }
   0xc   :  { %20 = dma.vmem_to_smem %s18_s14, 16, %s282_s16, [#allocation5]  }
   0xd   :  { %s28_s18 = sshll.u32 %s283_s17, 4  ;;  %s29_s18 = int_to_ptr.vmem [resolvable:$true] %s28_s18 }
   0xe   :  { %s244_s19 = scalar_lea.vmem %s29_s18, 768  ;;  %p249_p6 = scmp.lt.s32.totalorder %s29_s18, %s29_s18 }
   0xf   :  { %p245_p5 = scmp.ne.s32.totalorder %s29_s18, %s244_s19  ;;  %p250_p7 = scmp.lt.s32.totalorder %s244_s19, %s244_s19 }
  0x11   :  { %p251_p8 = por %p250_p7, %p249_p6 }
  0x13   :  { %p252_p9 = pnand %p251_p8, %p245_p5 }
  0x15   :  { %255 = shalt.err (!%p252_p9)
}
  0x16   :  { %s284_s0 = smov 256   ;;  %s285_s20 = smov 16  }
  0x17   :  { %34 = dma.hbm_to_vmem [thread:$0]  %s390_s2, 768, %s29_s18, [#allocation3], %s284_s0, %s284_s0, %s285_s20  }
  0x18   :  { %276 = dma.done.wait [#allocation5], 16  }
  0x19   :  { %277 = vsyncadd [#allocation5], 4294967280 }
  0x1a   :  { %278 = dma.done.wait [#allocation3], 768  }
  0x1b   :  { %279 = vsyncadd [#allocation3], 4294966528 }
  0x1c   :  { %41 = sfence }
  0x1d   :  { %v50_v0 = vld [vmem:[%s389_s1] sm:$0xff]  ;;  %v286_v1 = vmov 0   ;;  %v287_v2 = vmov 2   ;;  %v288_v3 = vmov 1   ;;  %v289_v4 = vmov 3   ;;  %v325_v7 = vld [vmem:[#allocation6 + $0x8] sm:$0xff] }
  0x1e   :  { %213 = vset.pattern.permute.xlu0 %v286_v1  ;;  %215 = vset.pattern.permute.xlu1 %v287_v2  ;;  %v323_v6 = vld [vmem:[#allocation6] sm:$0xff]  ;;  %v327_v8 = vld [vmem:[#allocation6 + $0x10] sm:$0xff]  ;;  %v329_v9 = vld [vmem:[#allocation6 + $0x18] sm:$0xff]  ;;  %s95_s1 = sld [smem:[#allocation2]]  ;;  %s290_s8 = smov [#allocation7]  }
  0x1f   :  { %53 = vperm.xlu0 %213, %v50_v0   ;;  %67 = vperm.xlu1 %215, %v50_v0   ;;  %v331_v11 = vld [vmem:[#allocation6 + $0x20] sm:$0xff]  ;;  %v333_v12 = vld [vmem:[#allocation6 + $0x28] sm:$0xff]  ;;  %s196_s2 = sld [smem:[#allocation2 + $0x4]]  ;;  %s180_s9 = sshll.u32 %s290_s8, 4  ;;  %s181_s9 = int_to_ptr.vmem [resolvable:$true] %s180_s9 }
  0x20   :  { %s193_s25 = sld [smem:[#allocation2 + $0x1]]  ;;  %s256_s10 = scalar_lea.vmem %s181_s9, 768 }
  0x21   :  { %s197_s26 = sld [smem:[#allocation2 + $0x5]]  ;;  %p257_p10 = scmp.ne.s32.totalorder %s181_s9, %s256_s10 }
  0x22   :  { %s200_s27 = sld [smem:[#allocation2 + $0x8]]  ;;  %p261_p11 = scmp.lt.s32.totalorder %s181_s9, %s181_s9 }
  0x23   :  { %214 = vset.pattern.permute.xlu0 %v288_v3  ;;  %216 = vset.pattern.permute.xlu1 %v289_v4  ;;  %s201_s28 = sld [smem:[#allocation2 + $0x9]]  ;;  %p262_p12 = scmp.lt.s32.totalorder %s256_s10, %s256_s10 }
  0x24   :  { %59 = vperm.xlu0 %214, %v50_v0   ;;  %75 = vperm.xlu1 %216, %v50_v0   ;;  %s347_s29 = sld [smem:[#allocation2 + $0x2]]  ;;  %v96_v36 = vstv %s95_s1 }
  0x25   :  { %s349_s30 = sld [smem:[#allocation2 + $0x6]]  ;;  %v122_v37 = vstv %s196_s2  ;;  %v97_v41 = vmul.f32 %v96_v36, %v323_v6  ;;  %v98_v42 = vmul.f32 %v96_v36, %v325_v7  ;;  %p263_p13 = por %p262_p12, %p261_p11 }
  0x26   :  { %s351_s4 = sld [smem:[#allocation2 + $0xa]]  ;;  %v100_v38 = vstv %s193_s25  ;;  %v123_v43 = vmul.f32 %v122_v37, %v323_v6  ;;  %v124_v44 = vmul.f32 %v122_v37, %v325_v7 }
  0x27   :  { %v126_v39 = vstv %s197_s26  ;;  %v101_v46 = vmul.f32 %v100_v38, %v327_v8  ;;  %v102_v47 = vmul.f32 %v100_v38, %v329_v9  ;;  %s195_s5 = sld [smem:[#allocation2 + $0x3]]  ;;  %p264_p0 = pnand %p263_p13, %p257_p10 }
  0x28   :  { %217 = vset.pattern.permute.xlu0 %v289_v4  ;;  %v149_v40 = vstv %s200_s27  ;;  %v127_v48 = vmul.f32 %v126_v39, %v327_v8  ;;  %v128_v49 = vmul.f32 %v126_v39, %v329_v9  ;;  %s199_s6 = sld [smem:[#allocation2 + $0x7]] }
  0x29   :  { %v153_v45 = vstv %s201_s28  ;;  %v150_v51 = vmul.f32 %v149_v40, %v323_v6  ;;  %v151_v52 = vmul.f32 %v149_v40, %v325_v7  ;;  %s203_s7 = sld [smem:[#allocation2 + $0xb]]  ;;  %v103_v58 = vadd.f32 %v101_v46, %v97_v41 }
  0x2a   :  { %v154_v53 = vmul.f32 %v153_v45, %v327_v8  ;;  %v155_v54 = vmul.f32 %v153_v45, %v329_v9  ;;  %v106_v55 = vstv %s347_s29  ;;  %v104_v59 = vadd.f32 %v102_v47, %v98_v42 }
  0x2b   :  { %v132_v56 = vstv %s349_s30  ;;  %v129_v60 = vadd.f32 %v127_v48, %v123_v43  ;;  %v130_v61 = vadd.f32 %v128_v49, %v124_v44  ;;  %v107_v62 = vmul.f32 %v106_v55, %v331_v11 }
  0x2c   :  { %v159_v57 = vstv %s351_s4  ;;  %v108_v63 = vmul.f32 %v106_v55, %v333_v12  ;;  %v133_v0 = vmul.f32 %v132_v56, %v331_v11  ;;  %v134_v1 = vmul.f32 %v132_v56, %v333_v12 }
  0x2d   :  { %v156_v2 = vadd.f32 %v154_v53, %v150_v51  ;;  %v157_v3 = vadd.f32 %v155_v54, %v151_v52  ;;  %v160_v4 = vmul.f32 %v159_v57, %v331_v11 }
  0x9a   :  { %v54_v5 = vpop.permute.xlu0 %53  ;;  %v68_v10 = vpop.permute.xlu1 %67 }
  0x9b   :  { %v56_v13 = vmul.f32 %v54_v5, %v323_v6  ;;  %v57_v14 = vmul.f32 %v54_v5, %v325_v7  ;;  %v70_v18 = vmul.f32 %v68_v10, %v331_v11  ;;  %v71_v19 = vmul.f32 %v68_v10, %v333_v12 }
  0x9c   :  { %v161_v5 = vmul.f32 %v159_v57, %v333_v12  ;;  %v109_v10 = vadd.f32 %v107_v62, %v103_v58 }
  0x9f   :  { %v60_v15 = vpop.permute.xlu0 %59  ;;  %v76_v22 = vpop.permute.xlu1 %75 }
  0xa0   :  { %v62_v16 = vmul.f32 %v60_v15, %v327_v8  ;;  %v63_v17 = vmul.f32 %v60_v15, %v329_v9  ;;  %v136_v15 = vadd.f32 %v134_v1, %v130_v61 }
  0xa2   :  { %v64_v20 = vadd.f32 %v62_v16, %v56_v13  ;;  %v65_v21 = vadd.f32 %v63_v17, %v57_v14  ;;  %v110_v13 = vadd.f32 %v108_v63, %v104_v59  ;;  %v135_v14 = vadd.f32 %v133_v0, %v129_v60 }
  0xa3   :  { %v162_v16 = vadd.f32 %v160_v4, %v156_v2  ;;  %v163_v17 = vadd.f32 %v161_v5, %v157_v3 }
  0xa4   :  { %v72_v23 = vadd.f32 %v70_v18, %v64_v20  ;;  %v73_v24 = vadd.f32 %v71_v19, %v65_v21  ;;  %v112_v18 = vstv %s195_s5  ;;  %v138_v19 = vstv %s199_s6 }
  0xa5   :  { %v165_v20 = vstv %s203_s7  ;;  %v113_v21 = vadd.f32 %v112_v18, %v109_v10 }
  0xa6   :  { %v78_v25 = vadd.f32 %v76_v22, %v72_v23  ;;  %v79_v26 = vadd.f32 %v76_v22, %v73_v24  ;;  %v114_v22 = vadd.f32 %v112_v18, %v110_v13  ;;  %v139_v23 = vadd.f32 %v138_v19, %v135_v14 }
  0xa7   :  { %v140_v24 = vadd.f32 %v138_v19, %v136_v15 }
  0xa8   :  { %v80_v27 = vmax.f32 %v78_v25, %v79_v26 }
  0xaa   :  { %81 = vmax.xlane.f32.xlu1 %v80_v27  ;;  %v167_v27 = vadd.f32 %v165_v20, %v163_v17 }
 0x133   :  { %v82_v28 = vpop.xlane.xlu1 %81 }
 0x134   :  { %v83_v29 = vsub.f32 %v78_v25, %v82_v28  ;;  %v84_v30 = vsub.f32 %v79_v26, %v82_v28  ;;  %v166_v26 = vadd.f32 %v165_v20, %v162_v16 }
 0x136   :  { %v85_v31 = vmul.f32 1.442695, %v83_v29  ;;  %v87_v32 = vmul.f32 1.442695, %v84_v30 }
 0x138   :  { %218 = vpow2.f32 %v85_v31 }
 0x139   :  { %220 = vpow2.f32 %v87_v32 }
 0x145   :  { %v341_v33 = vpop.eup %218 }
 0x146   :  { %v343_v34 = vpop.eup %220 }
 0x147   :  { %v89_v35 = vadd.f32 %v343_v34, %v341_v33 }
 0x149   :  { %90 = vadd.xlane.f32.xlu0 %v89_v35 }
 0x1d2   :  { %v91_v50 = vpop.xlane.xlu0 %90 }
 0x1d3   :  { %222 = vrcp.f32 %v91_v50 }
 0x1e0   :  { %v223_v25 = vpop.eup %222 }
 0x1e1   :  { %v93_v28 = vmul.f32 %v223_v25, %v341_v33  ;;  %v94_v29 = vmul.f32 %v223_v25, %v343_v34 }
 0x1e3   :  { %v115_v30 = vmul.f32 %v113_v21, %v93_v28  ;;  %v116_v31 = vmul.f32 %v114_v22, %v94_v29  ;;  %v141_v32 = vmul.f32 %v139_v23, %v93_v28  ;;  %v142_v35 = vmul.f32 %v140_v24, %v94_v29 }
 0x1e4   :  { %v168_v36 = vmul.f32 %v166_v26, %v93_v28  ;;  %v169_v37 = vmul.f32 %v167_v27, %v94_v29 }
 0x1e5   :  { %v117_v38 = vadd.f32 %v115_v30, %v323_v6  ;;  %v118_v39 = vadd.f32 %v116_v31, %v325_v7  ;;  %v143_v40 = vadd.f32 %v141_v32, %v327_v8  ;;  %v144_v41 = vadd.f32 %v142_v35, %v329_v9 }
 0x1e6   :  { %v170_v33 = vadd.f32 %v168_v36, %v331_v11  ;;  %v171_v34 = vadd.f32 %v169_v37, %v333_v12 }
 0x1e7   :  { %119 = vst [vmem:[#allocation7] sm:$0xff] %v117_v38  ;;  %120 = vst [vmem:[#allocation7 + $0x8] sm:$0xff] %v118_v39 }
 0x1e8   :  { %146 = vst [vmem:[#allocation7 + $0x10] sm:$0xff] %v143_v40  ;;  %147 = vst [vmem:[#allocation7 + $0x18] sm:$0xff] %v144_v41 }
 0x1e9   :  { %173 = vst [vmem:[#allocation7 + $0x20] sm:$0xff] %v170_v33  ;;  %174 = vst [vmem:[#allocation7 + $0x28] sm:$0xff] %v171_v34 }
 0x1ea   :  { %267 = shalt.err (!%p264_p0)
}
 0x1eb   :  { %186 = dma.vmem_to_hbm [thread:$0]  %s181_s9, 768, %s391_s3, [#allocation4], %s284_s0, %s284_s0, %s285_s20  }
 0x1ec   :  { %280 = dma.done.wait [#allocation4], 768  }
 0x1ed   :  { %281 = vsyncadd [#allocation4], 4294966528 }
 0x1ee   :  { %190 = vsyncpa [#allocation3], 1 }
 0x1ef   :  { %191 = vsyncpa [#allocation4], 1 }
 0x1f0   :  { %192 = vsyncpa [#allocation5], 1 }

</bundles_post_ra>
